<compile_context>
chip_gen: v7x
topology: tpu7x:2x2x1
jax: 0.10.0
libtpu: 0.0.40
codegen_flags: <defaults>
</compile_context>

<pallas_src>
import jax
import jax.numpy as jnp
from jax.experimental import pallas as pl
from jax.experimental.pallas import tpu as pltpu


_LANE = 128        # vreg lane width
_SUBLANE = 8       # f32 sublanes per vreg


def _pact_kernel(params_ref, x_ref, o_ref):
    # params_ref lives in SMEM: [k, b, alpha] (float32).
    k = params_ref[0]
    b = params_ref[1]
    alpha = params_ref[2]
    v = k * (x_ref[...].astype(jnp.float32) + b)
    # Faithful abs form (matches PyTorch even if a learnable alpha goes
    # negative; for alpha >= 0 it equals clamp(v, 0, alpha)).  The extra VPU
    # ops are fully hidden under the HBM DMA for this mem-bound kernel.
    y = 0.5 * (jnp.abs(v) - jnp.abs(v - alpha) + alpha)
    o_ref[...] = y.astype(o_ref.dtype)


def _device_kind():
    try:
        return jax.devices()[0].device_kind.lower()
    except Exception:
        return ""


def _target_block_bytes(kind):
    # v5e: ~820 GB/s HBM -> per-step overhead already <10% at 2-3 MiB and the
    # scoped-VMEM default is only 16 MiB; keep blocks modest.
    if ("v5 lite" in kind) or ("v5e" in kind) or ("v5litepod" in kind):
        return 3 * 1024 * 1024
    # v6e / v7x (and default): bigger blocks amortize the ~0.35 us/step cost
    # (at 3.2 TB/s a 2 MiB block is only ~1.3 us).  6 MiB * 2 arrays * 2 bufs
    # = 24 MiB, under the raised vmem limit and v7x's 64 MiB physical VMEM.
    return 6 * 1024 * 1024


def _choose_row_tile(rows, cols, itemsize, sublane, kind):
    target = _target_block_bytes(kind)
    bytes_per_row = cols * itemsize
    if rows * bytes_per_row <= target:
        row_tile = rows                       # single full block
    else:
        row_tile = max(sublane, (target // bytes_per_row) // sublane * sublane)
    # v7x has 2 TensorCores sharing the "parallel" grid axis: make sure a
    # large-ish input produces at least 2 grid steps so both cores (and both
    # HBM paths) are used.  No-op on v5e/v6e.
    if ("v7" in kind and pl.cdiv(rows, row_tile) < 2
            and rows >= 2 * sublane and rows * bytes_per_row > (1 << 20)):
        row_tile = max(sublane, pl.cdiv(rows, 2) // sublane * sublane)
    return row_tile


def scale_pact(x, k, b, alpha, *, donate_input=False):
    """Apply Scale_PACT elementwise. Returns an array with x's shape/dtype."""
    orig_shape = x.shape
    orig_dtype = x.dtype
    total = int(x.size)
    if total == 0:
        return x

    itemsize = jnp.dtype(orig_dtype).itemsize
    kind = _device_kind()

    x_flat = x.reshape(-1)                    # free re-view of contiguous data

    # ---- lane-dense column width that divides the flat length (no copies) --
    cols = None
    for c in (1024, 512, 384, 256, 128):      # prefer wide slabs
        if total % c == 0:
            cols = c
            break

    padded_total = total
    if cols is None:
        # Rare fallback: element count not a multiple of 128.  Pad only up to
        # the next multiple of `cols` (< 1024 extra elements), then trim.
        # TODO(synk): handle this tail with a tiny second kernel instead of a
        # whole-array pad/trim copy if such shapes ever show up hot.
        cols = 1024 if total >= 1024 else -(-total // _LANE) * _LANE
        padded_total = -(-total // cols) * cols
        x_flat = jnp.pad(x_flat, (0, padded_total - total))

    rows = padded_total // cols
    x2 = x_flat.reshape(rows, cols)

    # ---- row tiling ---------------------------------------------------------
    packing = max(1, 4 // itemsize)           # f32:1, bf16:2, int8:4
    sublane = _SUBLANE * packing              # native sublane granularity
    row_tile = _choose_row_tile(rows, cols, itemsize, sublane, kind)
    grid = (pl.cdiv(rows, row_tile),)         # partial last block is masked

    params = jnp.array([k, b, alpha], dtype=jnp.float32)

    # Advisory: bandwidth-bound elementwise op (helps XLA overlap neighbors).
    cost = pl.CostEstimate(flops=8 * total, transcendentals=0,
                           bytes_accessed=2 * total * itemsize)

    extra = {}
    if donate_input:
        # Same shape/dtype in and out: aliasing halves peak HBM footprint when
        # the caller no longer needs x.  Off by default (non-destructive).
        extra["input_output_aliases"] = {1: 0}

    out2 = pl.pallas_call(
        _pact_kernel,
        out_shape=jax.ShapeDtypeStruct((rows, cols), orig_dtype),
        grid_spec=pltpu.PrefetchScalarGridSpec(
            num_scalar_prefetch=0,
            grid=grid,
            in_specs=[
                pl.BlockSpec(memory_space=pltpu.SMEM),               # [k,b,alpha]
                pl.BlockSpec((row_tile, cols), lambda i: (i, 0)),    # x tile
            ],
            out_specs=pl.BlockSpec((row_tile, cols), lambda i: (i, 0)),
        ),
        compiler_params=pltpu.CompilerParams(
            dimension_semantics=("parallel",),
            vmem_limit_bytes=48 * 1024 * 1024,
        ),
        cost_estimate=cost,
        **extra,
    )(params, x2)

    out_flat = out2.reshape(-1)
    if padded_total != total:
        out_flat = out_flat[:total]
    return out_flat.reshape(orig_shape)


if __name__ == "__main__":
    key = jax.random.PRNGKey(0)
    k1, k2, k3 = jax.random.split(key, 3)

    # Deterministic parameter init identical to the module's __init__.
    k_param, b_param, alpha_param = 1.0, 0.0, 6.0

    def torch_ref(x, k, b, alpha):
        v = k * (x.astype(jnp.float32) + b)
        return 0.5 * (jnp.abs(v) - jnp.abs(v - alpha) + alpha)

    # 1) Small NCHW input consistent with a conv-activation usage (no-pad path).
    x1 = jax.random.normal(k1, (2, 4, 16, 16), dtype=jnp.float32) * 4.0
    y1 = jax.block_until_ready(scale_pact(x1, k_param, b_param, alpha_param))
    assert y1.shape == x1.shape and y1.dtype == x1.dtype
    assert jnp.allclose(y1, torch_ref(x1, k_param, b_param, alpha_param),
                        atol=1e-5), "f32 NCHW mismatch"

    # 2) Awkward (non-128-multiple) shape: exercises the small-pad fallback.
    x2 = jax.random.normal(k2, (3, 5, 7, 11), dtype=jnp.float32) * 4.0
    y2 = jax.block_until_ready(scale_pact(x2, k_param, b_param, alpha_param))
    assert y2.shape == x2.shape and y2.dtype == x2.dtype
    assert jnp.allclose(y2, torch_ref(x2, k_param, b_param, alpha_param),
                        atol=1e-5), "padded-shape mismatch"

    # 3) bf16 input: f32-compute + cast-back-on-store path.
    x3 = (jax.random.normal(k3, (2, 3, 9, 13), dtype=jnp.float32) * 4.0
          ).astype(jnp.bfloat16)
    y3 = jax.block_until_ready(scale_pact(x3, k_param, b_param, alpha_param))
    assert y3.shape == x3.shape and y3.dtype == x3.dtype
    assert jnp.allclose(y3.astype(jnp.float32),
                        torch_ref(x3, k_param, b_param, alpha_param),
                        atol=5e-2), "bf16 mismatch"

    # 4) Negative alpha (learnable alpha can go negative during training):
    #    the faithful abs form must match the PyTorch formula, not clamp().
    kn, bn, an = 0.7, -0.3, -1.5
    y4 = jax.block_until_ready(scale_pact(x1, kn, bn, an))
    assert jnp.allclose(y4, torch_ref(x1, kn, bn, an), atol=1e-5), \
        "negative-alpha mismatch"

    print("KERNEL_OK")
</pallas_src>

<mosaic_0001>
module attributes {stable_mosaic.version = 11 : i64} {
  func.func @_pact_kernel(%arg0: i32, %arg1: memref<3xf32, #tpu.memory_space<smem>>, %arg2: memref<2x1024xf32, #tpu.memory_space<vmem>>, %arg3: memref<2x1024xf32, #tpu.memory_space<vmem>>) attributes {dimension_semantics = [#tpu.dimension_semantics<parallel>], iteration_bounds = array<i64: 1>, scalar_prefetch = 0 : i64, scratch_operands = 0 : i64, tpu.core_type = #tpu.core_type<tc>, window_params = [{transform_indices = @transform_0, window_bounds = array<i64: 3>}, {transform_indices = @transform_1, window_bounds = array<i64: 2, 1024>}, {transform_indices = @transform_2, window_bounds = array<i64: 2, 1024>}]} {
    %c0 = arith.constant 0 : index
    %0 = memref.load %arg1[%c0] : memref<3xf32, #tpu.memory_space<smem>>
    %c1 = arith.constant 1 : index
    %1 = memref.load %arg1[%c1] : memref<3xf32, #tpu.memory_space<smem>>
    %c2 = arith.constant 2 : index
    %2 = memref.load %arg1[%c2] : memref<3xf32, #tpu.memory_space<smem>>
    %c0_0 = arith.constant 0 : index
    %c0_1 = arith.constant 0 : index
    %3 = vector.load %arg2[%c0_0, %c0_1] : memref<2x1024xf32, #tpu.memory_space<vmem>>, vector<2x1024xf32>
    %4 = vector.broadcast %1 : f32 to vector<2x1024xf32>
    %5 = arith.addf %3, %4 : vector<2x1024xf32>
    %6 = vector.broadcast %0 : f32 to vector<2x1024xf32>
    %7 = arith.mulf %6, %5 : vector<2x1024xf32>
    %8 = math.absf %7 : vector<2x1024xf32>
    %9 = vector.broadcast %2 : f32 to vector<2x1024xf32>
    %10 = arith.subf %7, %9 : vector<2x1024xf32>
    %11 = math.absf %10 : vector<2x1024xf32>
    %12 = arith.subf %8, %11 : vector<2x1024xf32>
    %13 = vector.broadcast %2 : f32 to vector<2x1024xf32>
    %14 = arith.addf %12, %13 : vector<2x1024xf32>
    %cst = arith.constant 5.000000e-01 : f32
    %15 = vector.broadcast %cst : f32 to vector<2x1024xf32>
    %16 = arith.mulf %15, %14 : vector<2x1024xf32>
    %c0_2 = arith.constant 0 : index
    %c0_3 = arith.constant 0 : index
    %17 = vector.load %arg3[%c0_2, %c0_3] : memref<2x1024xf32, #tpu.memory_space<vmem>>, vector<2x1024xf32>
    tpu.vector_store %arg3[%c0_2, %c0_3], %16 {strides = array<i32>} : memref<2x1024xf32, #tpu.memory_space<vmem>>, vector<2x1024xf32>,
    return
  }
  func.func @transform_0(%arg0: i32) -> i32 {
    %c0_i32 = arith.constant 0 : i32
    %c0_i32_0 = arith.constant 0 : i32
    return %c0_i32 : i32
  }
  func.func @transform_1(%arg0: i32) -> (i32, i32) {
    %c0_i32 = arith.constant 0 : i32
    %c0_i32_0 = arith.constant 0 : i32
    return %arg0, %c0_i32 : i32, i32
  }
  func.func @transform_2(%arg0: i32) -> (i32, i32) {
    %c0_i32 = arith.constant 0 : i32
    %c0_i32_0 = arith.constant 0 : i32
    return %arg0, %c0_i32 : i32, i32
  }
}

</mosaic_0001>

<bundles_post_ra>
// kernel: tpu_custom_call.1
= control target key start
LH: loop header
LB: loop body
LE: loop exit
PB: predicated region body
PF: predicated region fallthrough
CT: control target
= control target key end

     0   :  { %7 = vsyncpa [#allocation5], 0  ;;  %s196_s0 = inlined_call_operand.hbm [shape: f32[3], index: 0, kind: input, shape index: {}]   ;;  %s197_s1 = inlined_call_operand.hbm [shape: f32[2,1024], index: 1, kind: input, shape index: {}]   ;;  %s198_s2 = inlined_call_operand.hbm [shape: f32[2,1024], index: 2, kind: output, shape index: {}]  }
   0x1   :  { %8 = vsyncpa [#allocation3], 0 }
   0x2   :  { %9 = vsyncpa [#allocation4], 0  ;;  %s82_s11 = scalar_lea.hbm %s196_s0, 16 }
   0x3   :  { %p83_p0 = scmp.ne.s32.totalorder %s196_s0, %s82_s11  ;;  %p86_p1 = scmp.lt.u32.totalorder %s82_s11, %s196_s0 }
   0x5   :  { %p88_p2 = pnand %p86_p1, %p83_p0 }
   0x7   :  { %91 = shalt.err (!%p88_p2)
}
   0x8   :  { %s142_s16 = smov [#allocation2]   ;;  %s143_s19 = smov [#allocation6]  }
   0x9   :  { %17 = dma.hbm_to_smem %s196_s0, 16, %s142_s16, [#allocation5]  }
   0xa   :  { %s24_s20 = sshll.u32 %s143_s19, 4  ;;  %s92_s23 = scalar_lea.hbm %s197_s1, 256  ;;  %s25_s20 = int_to_ptr.vmem [resolvable:$true] %s24_s20 }
   0xb   :  { %p93_p3 = scmp.ne.s32.totalorder %s197_s1, %s92_s23  ;;  %p96_p4 = scmp.lt.u32.totalorder %s92_s23, %s197_s1 }
   0xd   :  { %p98_p5 = pnand %p96_p4, %p93_p3 }
   0xf   :  { %101 = shalt.err (!%p98_p5)
}
  0x10   :  { %s102_s28 = scalar_lea.vmem %s25_s20, 256  ;;  %p107_p7 = scmp.lt.s32.totalorder %s25_s20, %s25_s20 }
  0x11   :  { %p103_p6 = scmp.ne.s32.totalorder %s25_s20, %s102_s28  ;;  %p108_p8 = scmp.lt.s32.totalorder %s102_s28, %s102_s28 }
  0x13   :  { %p109_p9 = por %p108_p8, %p107_p7 }
  0x15   :  { %p110_p10 = pnand %p109_p9, %p103_p6 }
  0x17   :  { %113 = shalt.err (!%p110_p10)
}
  0x18   :  { %27 = dma.hbm_to_vmem [thread:$0]  %s197_s1, 256, %s25_s20, [#allocation3]  }
  0x19   :  { %136 = dma.done.wait [#allocation5], 16  }
  0x1a   :  { %137 = vsyncadd [#allocation5], 4294967280 }
  0x1b   :  { %138 = dma.done.wait [#allocation3], 256  }
  0x1c   :  { %139 = vsyncadd [#allocation3], 4294967040 }
  0x1d   :  { %34 = sfence }
  0x1e   :  { %s35_s30 = sld [smem:[#allocation2]]  ;;  %s77_s3 = sld [smem:[#allocation2 + $0x1]]  ;;  %v38_v0 = vld [vmem:[#allocation6] sm:$0xff]  ;;  %v39_v1 = vld [vmem:[#allocation6 + $0x8] sm:$0xff] }
  0x1f   :  { %s78_s4 = sld [smem:[#allocation2 + $0x2]]  ;;  %s144_s1 = smov [#allocation7]  }
  0x20   :  { %s67_s5 = sshll.u32 %s144_s1, 4  ;;  %s68_s5 = int_to_ptr.vmem [resolvable:$true] %s67_s5 }
  0x21   :  { %s114_s6 = scalar_lea.vmem %s68_s5, 256  ;;  %p119_p12 = scmp.lt.s32.totalorder %s68_s5, %s68_s5 }
  0x22   :  { %p115_p11 = scmp.ne.s32.totalorder %s68_s5, %s114_s6  ;;  %p120_p13 = scmp.lt.s32.totalorder %s114_s6, %s114_s6 }
  0x24   :  { %v40_v2 = vstv %s77_s3  ;;  %v43_v3 = vstv %s35_s30  ;;  %p121_p0 = por %p120_p13, %p119_p12 }
  0x25   :  { %v41_v4 = vadd.f32 %v40_v2, %v38_v0  ;;  %v42_v5 = vadd.f32 %v40_v2, %v39_v1  ;;  %v48_v6 = vstv %s78_s4 }
  0x26   :  { %p122_p1 = pnand %p121_p0, %p115_p11 }
  0x27   :  { %v44_v7 = vmul.f32 %v43_v3, %v41_v4  ;;  %v45_v8 = vmul.f32 %v43_v3, %v42_v5 }
  0x29   :  { %v46_v9 = vand.u32 2147483647, %v44_v7  ;;  %v49_v10 = vsub.f32 %v44_v7, %v48_v6  ;;  %v47_v11 = vand.u32 2147483647, %v45_v8  ;;  %v50_v12 = vsub.f32 %v45_v8, %v48_v6 }
  0x2b   :  { %v51_v13 = vand.u32 2147483647, %v49_v10  ;;  %v52_v14 = vand.u32 2147483647, %v50_v12 }
  0x2d   :  { %v53_v15 = vsub.f32 %v46_v9, %v51_v13  ;;  %v54_v16 = vsub.f32 %v47_v11, %v52_v14 }
  0x2f   :  { %v55_v17 = vadd.f32 %v53_v15, %v48_v6  ;;  %v56_v18 = vadd.f32 %v54_v16, %v48_v6 }
  0x31   :  { %v57_v19 = vmul.f32 0.5, %v55_v17  ;;  %v58_v20 = vmul.f32 0.5, %v56_v18 }
  0x33   :  { %59 = vst [vmem:[#allocation7] sm:$0xff] %v57_v19  ;;  %60 = vst [vmem:[#allocation7 + $0x8] sm:$0xff] %v58_v20 }
  0x34   :  { %125 = shalt.err (!%p122_p1)
}
  0x35   :  { %s126_s9 = scalar_lea.hbm %s198_s2, 256 }
  0x36   :  { %p127_p2 = scmp.ne.s32.totalorder %s198_s2, %s126_s9  ;;  %p130_p3 = scmp.lt.u32.totalorder %s126_s9, %s198_s2 }
  0x38   :  { %p132_p4 = pnand %p130_p3, %p127_p2 }
  0x3a   :  { %135 = shalt.err (!%p132_p4)
}
  0x3b   :  { %70 = dma.vmem_to_hbm [thread:$0]  %s68_s5, 256, %s198_s2, [#allocation4]  }
  0x3c   :  { %140 = dma.done.wait [#allocation4], 256  }
  0x3d   :  { %141 = vsyncadd [#allocation4], 4294967040 }
  0x3e   :  { %74 = vsyncpa [#allocation3], 1 }
  0x3f   :  { %75 = vsyncpa [#allocation4], 1 }
  0x40   :  { %76 = vsyncpa [#allocation5], 1 }

</bundles_post_ra>
